<compile_context>
chip_gen: v6e
topology: v6e:2x2x1
jax: 0.10.0
libtpu: 0.0.40
codegen_flags: <defaults>
</compile_context>

<pallas_src>
import jax
import jax.numpy as jnp
from jax.experimental import pallas as pl
from jax.experimental.pallas import tpu as pltpu


def _affine_kernel(wb_ref, xT_ref, o_ref):
    # wb_ref: SMEM [4] = [w0, w1, w2, b]  (fused 3->1 affine map)
    # xT_ref: VMEM [3, TB]  -- batch on the 128-lane axis (lane-dense loads)
    # o_ref : VMEM [1, TB]  -- lane-dense output (unmasked stores)
    xT = xT_ref[...]
    y = (wb_ref[0] * xT[0:1, :]
         + wb_ref[1] * xT[1:2, :]
         + wb_ref[2] * xT[2:3, :]
         + wb_ref[3])
    o_ref[...] = y.astype(o_ref.dtype)


def mlp_forward(x, w1, b1, w2, b2, *, tile_b=1024):
    """y = fc3(fc1(x)) with x:[B,3]; weights stored as [in_features, out_features]."""
    B = x.shape[0]

    # --- fold the two linear layers (exact: no activation in between) ---
    w_fused = (w1 @ w2).reshape(3)                                   # [3]
    b_fused = (b1 @ w2 + b2).reshape(1)                              # [1]
    wb = jnp.concatenate([w_fused, b_fused]).astype(jnp.float32)     # [4] -> SMEM

    # --- lane-dense layout: batch on lanes, padded to a multiple of the tile ---
    padded = ((B + 127) // 128) * 128
    tb = min(tile_b, padded)                         # lane tile (multiple of 128)
    padded = ((B + tb - 1) // tb) * tb
    xT = jnp.pad(x.T.astype(jnp.float32), ((0, 0), (0, padded - B)))  # [3, padded]

    yT = pl.pallas_call(
        _affine_kernel,
        out_shape=jax.ShapeDtypeStruct((1, padded), jnp.float32),
        grid=(padded // tb,),
        in_specs=[
            # fused weights + bias: 16 bytes, resident in SMEM across all steps
            pl.BlockSpec(memory_space=pltpu.MemorySpace.SMEM),
            # x^T tile: lanes = batch, sublane dim = full 3 features
            pl.BlockSpec((3, tb), lambda i: (0, i)),
        ],
        out_specs=pl.BlockSpec((1, tb), lambda i: (0, i)),
        compiler_params=pltpu.CompilerParams(
            dimension_semantics=("parallel",),  # shards batch across TCs on v7x
        ),
    )(wb, xT)

    return yT[0, :B].reshape(B, 1)


def init_params(key):
    # Deterministic init mirroring nn.Linear's uniform(-1/sqrt(fan_in), ...),
    # stored transposed as [in_features, out_features].
    k1, k2, k3, k4 = jax.random.split(key, 4)
    bound1 = 1.0 / jnp.sqrt(3.0)
    bound2 = 1.0 / jnp.sqrt(16.0)
    w1 = jax.random.uniform(k1, (3, 16), jnp.float32, -bound1, bound1)
    b1 = jax.random.uniform(k2, (1, 16), jnp.float32, -bound1, bound1)
    w2 = jax.random.uniform(k3, (16, 1), jnp.float32, -bound2, bound2)
    b2 = jax.random.uniform(k4, (1, 1), jnp.float32, -bound2, bound2)
    return w1, b1, w2, b2


if __name__ == "__main__":
    key = jax.random.PRNGKey(0)
    kx, kp = jax.random.split(key)

    w1, b1, w2, b2 = init_params(kp)

    # Small example consistent with the module's forward (in_features = 3).
    B = 8
    x = jax.random.normal(kx, (B, 3), jnp.float32)
    out = jax.block_until_ready(mlp_forward(x, w1, b1, w2, b2))
    ref = (x @ w1 + b1) @ w2 + b2
    assert out.shape == (B, 1)
    assert jnp.allclose(out, ref, atol=1e-5, rtol=1e-5), "mismatch vs reference (B=8)"

    # Also exercise the multi-tile (gridded) path with a small tile.
    B2 = 384
    x2 = jax.random.normal(kx, (B2, 3), jnp.float32)
    out2 = jax.block_until_ready(mlp_forward(x2, w1, b1, w2, b2, tile_b=128))
    ref2 = (x2 @ w1 + b1) @ w2 + b2
    assert out2.shape == (B2, 1)
    assert jnp.allclose(out2, ref2, atol=1e-5, rtol=1e-5), "mismatch vs reference (B=384)"

    print("KERNEL_OK")
</pallas_src>

<mosaic_0001>
module attributes {stable_mosaic.version = 11 : i64} {
  func.func @_affine_kernel(%arg0: i32, %arg1: memref<4xf32, #tpu.memory_space<smem>>, %arg2: memref<3x128xf32, #tpu.memory_space<vmem>>, %arg3: memref<1x128xf32, #tpu.memory_space<vmem>>) attributes {dimension_semantics = [#tpu.dimension_semantics<parallel>], iteration_bounds = array<i64: 1>, scalar_prefetch = 0 : i64, scratch_operands = 0 : i64, tpu.core_type = #tpu.core_type<tc>, window_params = [{transform_indices = @transform_0, window_bounds = array<i64: 4>}, {transform_indices = @transform_1, window_bounds = array<i64: 3, 128>}, {transform_indices = @transform_2, window_bounds = array<i64: 1, 128>}]} {
    %c0 = arith.constant 0 : index
    %c0_0 = arith.constant 0 : index
    %0 = vector.load %arg2[%c0, %c0_0] : memref<3x128xf32, #tpu.memory_space<vmem>>, vector<3x128xf32>
    %c0_1 = arith.constant 0 : index
    %1 = memref.load %arg1[%c0_1] : memref<4xf32, #tpu.memory_space<smem>>
    %2 = vector.extract_strided_slice %0 {offsets = [0, 0], sizes = [1, 128], strides = [1, 1]} : vector<3x128xf32> to vector<1x128xf32>
    %3 = vector.broadcast %1 : f32 to vector<1x128xf32>
    %4 = arith.mulf %3, %2 : vector<1x128xf32>
    %c1 = arith.constant 1 : index
    %5 = memref.load %arg1[%c1] : memref<4xf32, #tpu.memory_space<smem>>
    %6 = vector.extract_strided_slice %0 {offsets = [1, 0], sizes = [1, 128], strides = [1, 1]} : vector<3x128xf32> to vector<1x128xf32>
    %7 = vector.broadcast %5 : f32 to vector<1x128xf32>
    %8 = arith.mulf %7, %6 : vector<1x128xf32>
    %9 = arith.addf %4, %8 : vector<1x128xf32>
    %c2 = arith.constant 2 : index
    %10 = memref.load %arg1[%c2] : memref<4xf32, #tpu.memory_space<smem>>
    %11 = vector.extract_strided_slice %0 {offsets = [2, 0], sizes = [1, 128], strides = [1, 1]} : vector<3x128xf32> to vector<1x128xf32>
    %12 = vector.broadcast %10 : f32 to vector<1x128xf32>
    %13 = arith.mulf %12, %11 : vector<1x128xf32>
    %14 = arith.addf %9, %13 : vector<1x128xf32>
    %c3 = arith.constant 3 : index
    %15 = memref.load %arg1[%c3] : memref<4xf32, #tpu.memory_space<smem>>
    %16 = vector.broadcast %15 : f32 to vector<1x128xf32>
    %17 = arith.addf %14, %16 : vector<1x128xf32>
    %c0_2 = arith.constant 0 : index
    %c0_3 = arith.constant 0 : index
    %18 = vector.load %arg3[%c0_2, %c0_3] : memref<1x128xf32, #tpu.memory_space<vmem>>, vector<1x128xf32>
    tpu.vector_store %arg3[%c0_2, %c0_3], %17 {strides = array<i32>} : memref<1x128xf32, #tpu.memory_space<vmem>>, vector<1x128xf32>,
    return
  }
  func.func @transform_0(%arg0: i32) -> i32 {
    %c0_i32 = arith.constant 0 : i32
    %c0_i32_0 = arith.constant 0 : i32
    return %c0_i32 : i32
  }
  func.func @transform_1(%arg0: i32) -> (i32, i32) {
    %c0_i32 = arith.constant 0 : i32
    %c0_i32_0 = arith.constant 0 : i32
    return %c0_i32, %arg0 : i32, i32
  }
  func.func @transform_2(%arg0: i32) -> (i32, i32) {
    %c0_i32 = arith.constant 0 : i32
    %c0_i32_0 = arith.constant 0 : i32
    return %c0_i32, %arg0 : i32, i32
  }
}

</mosaic_0001>

<bundles_post_ra>
// kernel: tpu_custom_call.1
= control target key start
LH: loop header
LB: loop body
LE: loop exit
PB: predicated region body
PF: predicated region fallthrough
CT: control target
= control target key end

     0   :  { %7 = vsyncpa [#allocation5], 0  ;;  %s160_s0 = inlined_call_operand.hbm [shape: f32[4], index: 0, kind: input, shape index: {}]   ;;  %s161_s1 = inlined_call_operand.hbm [shape: f32[3,128], index: 1, kind: input, shape index: {}]   ;;  %s162_s2 = inlined_call_operand.hbm [shape: f32[1,128], index: 2, kind: output, shape index: {}]  }
   0x1   :  { %8 = vsyncpa [#allocation3], 0 }
   0x2   :  { %9 = vsyncpa [#allocation4], 0  ;;  %s133_s9 = smov [#allocation2]   ;;  %s134_s12 = smov [#allocation6]  }
   0x3   :  { %17 = dma.hbm_to_smem %s160_s0, 16, %s133_s9, [#allocation5]  }
   0x4   :  { %s24_s13 = sshll.u32 %s134_s12, 4  ;;  %s25_s13 = int_to_ptr.vmem [resolvable:$true] %s24_s13 }
   0x5   :  { %s95_s14 = scalar_lea.vmem %s25_s13, 64  ;;  %p100_p1 = scmp.lt.s32.totalorder %s25_s13, %s25_s13 }
   0x6   :  { %p96_p0 = scmp.ne.s32.totalorder %s25_s13, %s95_s14  ;;  %p101_p2 = scmp.lt.s32.totalorder %s95_s14, %s95_s14 }
   0x8   :  { %p102_p3 = por %p101_p2, %p100_p1 }
   0xa   :  { %p103_p4 = pnand %p102_p3, %p96_p0 }
   0xc   :  { %106 = shalt.err (!%p103_p4)
}
   0xd   :  { %27 = dma.hbm_to_vmem [thread:$0]  %s161_s1, 64, %s25_s13, [#allocation3]  }
   0xe   :  { %127 = dma.done.wait [#allocation5], 16  }
   0xf   :  { %128 = vsyncadd [#allocation5], 4294967280 }
  0x10   :  { %129 = dma.done.wait [#allocation3], 64  }
  0x11   :  { %130 = vsyncadd [#allocation3], 4294967232 }
  0x12   :  { %34 = sfence }
  0x13   :  { %s36_s0 = sld [smem:[#allocation2]]  ;;  %v35_v0 = vld [vmem:[#allocation6] sm:$0x7]  ;;  %s135_s1 = smov [#allocation7]  }
  0x14   :  { %s73_s17 = sld [smem:[#allocation2 + $0x1]]  ;;  %s63_s20 = sshll.u32 %s135_s1, 4  ;;  %s64_s20 = int_to_ptr.vmem [resolvable:$true] %s63_s20 }
  0x15   :  { %s74_s18 = sld [smem:[#allocation2 + $0x2]]  ;;  %s107_s21 = scalar_lea.vmem %s64_s20, 16 }
  0x16   :  { %s75_s19 = sld [smem:[#allocation2 + $0x3]]  ;;  %p108_p5 = scmp.ne.s32.totalorder %s64_s20, %s107_s21 }
  0x17   :  { %s111_s22 = scalar_lea.vmem %s64_s20, 32  ;;  %p112_p6 = scmp.lt.s32.totalorder %s64_s20, %s64_s20 }
  0x18   :  { %p113_p7 = scmp.lt.s32.totalorder %s111_s22, %s107_s21 }
  0x19   :  { %v37_v1 = vstv %s36_s0 }
  0x1a   :  { %v40_v2 = vstv %s73_s17  ;;  %v38_v3 = vmul.f32 %v37_v1, %v35_v0  ;;  %p114_p8 = por %p113_p7, %p112_p6 }
  0x1b   :  { %v41_v4 = vmul.f32 %v40_v2, %v35_v0  ;;  %v47_v5 = vstv %s74_s18 }
  0x1c   :  { %v48_v6 = vmul.f32 %v47_v5, %v35_v0  ;;  %v54_v10 = vstv %s75_s19  ;;  %p115_p9 = pnand %p114_p8, %p108_p5 }
  0x1d   :  { %v43_v7 = vrot.slane %v41_v4, 1 }
  0x1e   :  { %v50_v8 = vrot.slane %v48_v6, 2 }
  0x1f   :  { %v45_v9 = vadd.f32 %v43_v7, %v38_v3 }
  0x21   :  { %v52_v11 = vadd.f32 %v50_v8, %v45_v9 }
  0x23   :  { %v55_v12 = vadd.f32 %v54_v10, %v52_v11 }
  0x25   :  { %56 = vst [vmem:[#allocation7] sm:$0x1] %v55_v12 }
  0x26   :  { %118 = shalt.err (!%p115_p9)
}
  0x27   :  { %66 = dma.vmem_to_hbm [thread:$0]  %s64_s20, 16, %s162_s2, [#allocation4]  }
  0x28   :  { %131 = dma.done.wait [#allocation4], 16  }
  0x29   :  { %132 = vsyncadd [#allocation4], 4294967280 }
  0x2a   :  { %70 = vsyncpa [#allocation3], 1 }
  0x2b   :  { %71 = vsyncpa [#allocation4], 1 }
  0x2c   :  { %72 = vsyncpa [#allocation5], 1 }

</bundles_post_ra>
